<compile_context>
chip_gen: v7x
topology: tpu7x:2x2x1
jax: 0.10.0
libtpu: 0.0.40
codegen_flags: <defaults>
</compile_context>

<pallas_src>
import math
import jax
import jax.numpy as jnp
from jax.experimental import pallas as pl
from jax.experimental.pallas import tpu as pltpu

NOISY_SIGMA = 0.5


# ----------------------------------------------------------------------------- utils
def _round_up(n, m):
    return (n + m - 1) // m * m


def _pick_tile(dim, unit, tmax):
    """Largest multiple of `unit` that divides `dim` (dim % unit == 0) and is <= tmax."""
    best = unit
    cap = min(tmax, dim)
    t = unit
    while t <= cap:
        if dim % t == 0:
            best = t
        t += unit
    return best


def _factorized_noise(key, n):
    v = jax.random.normal(key, (n,), dtype=jnp.float32)
    return jnp.sign(v) * jnp.sqrt(jnp.abs(v))


# ----------------------------------------------------------------------------- kernels
def _noisy_fwd_kernel(x_ref, muwt_ref, sigwt_ref, mub_ref, sigb_ref,
                      epsi_ref, epso_ref, o_ref):
    """grid = (B_tiles [parallel], O_tiles [parallel], I_tiles [arbitrary/reduction])."""
    i = pl.program_id(2)
    ti = muwt_ref.shape[0]
    wdt = muwt_ref.dtype

    @pl.when(i == 0)
    def _():
        o_ref[...] = jnp.zeros_like(o_ref)          # o_ref is the f32 accumulator

    x = x_ref[...]                                                   # (TB, TI)
    # eps_i is a resident (1, I_pad) block; slice the current reduction window.
    eps_i = epsi_ref[:, pl.ds(pl.multiple_of(i * ti, 128), ti)]      # (1, TI) f32
    eps_o = epso_ref[...]                                            # (1, TO) f32

    # mean path:  x @ mu_W.T        (weights pre-transposed -> plain matmul)
    mu_p = jnp.dot(x.astype(wdt), muwt_ref[...],
                   preferred_element_type=jnp.float32)
    # noise path: (x * eps_i) @ sigma_W.T, scaled by eps_o (VPU math kept in f32)
    sig_p = jnp.dot((x * eps_i).astype(wdt), sigwt_ref[...],
                    preferred_element_type=jnp.float32)
    o_ref[...] += mu_p + eps_o * sig_p               # single merged accumulator

    @pl.when(i == pl.num_programs(2) - 1)
    def _():
        o_ref[...] += mub_ref[...] + sigb_ref[...] * eps_o


def _linear_fwd_kernel(x_ref, muwt_ref, mub_ref, o_ref):
    """Eval-mode fast path: y = x @ mu_W.T + mu_b (sigma_W never touches HBM)."""
    i = pl.program_id(2)
    wdt = muwt_ref.dtype

    @pl.when(i == 0)
    def _():
        o_ref[...] = jnp.zeros_like(o_ref)

    o_ref[...] += jnp.dot(x_ref[...].astype(wdt), muwt_ref[...],
                          preferred_element_type=jnp.float32)

    @pl.when(i == pl.num_programs(2) - 1)
    def _():
        o_ref[...] += mub_ref[...]


# ----------------------------------------------------------------------------- weight prep (cache me!)
def prepare_noisy_linear_params(mu_W, sigma_W, mu_b, sigma_b,
                                weight_dtype=jnp.bfloat16):
    """One-time prep: transpose weights to (I, O), pad to 128-multiples, cast to
    the streaming dtype.  Cache the result across forward calls — it only changes
    when the parameters are updated."""
    O, I = mu_W.shape
    I_pad, O_pad = _round_up(I, 128), _round_up(O, 128)

    def pad_t(w):
        wt = w.astype(weight_dtype).T                               # (I, O)
        if (I, O) == (I_pad, O_pad):
            return wt
        return jnp.zeros((I_pad, O_pad), weight_dtype).at[:I, :O].set(wt)

    def pad_b(b):
        bb = b.astype(jnp.float32).reshape(1, O)
        if O == O_pad:
            return bb
        return jnp.zeros((1, O_pad), jnp.float32).at[:, :O].set(bb)

    return dict(muwt=pad_t(mu_W), sigwt=pad_t(sigma_W),
                mub=pad_b(mu_b), sigb=pad_b(sigma_b),
                in_features=I, out_features=O)


# ----------------------------------------------------------------------------- forward
def noisy_linear_prepared(x, params, eps_i=None, eps_o=None, *, training=True,
                          key=None, tb_max=256, ti_max=1024, to_max=512):
    """x: (B, I).  params: output of prepare_noisy_linear_params.  Returns (B, O)."""
    B, I = x.shape
    O = params["out_features"]
    assert I == params["in_features"], "input feature mismatch"
    I_pad, O_pad = params["muwt"].shape
    wbytes = jnp.dtype(params["muwt"].dtype).itemsize
    xbytes = jnp.dtype(x.dtype).itemsize
    f32 = jnp.float32

    if training:
        if eps_i is None or eps_o is None:
            if key is None:
                raise ValueError(
                    "training=True needs eps_i/eps_o, or pass key= to sample "
                    "factorized noise (sign(v)*sqrt(|v|)) inside the wrapper.")
            ki, ko = jax.random.split(key)
            if eps_i is None:
                eps_i = _factorized_noise(ki, I)
            if eps_o is None:
                eps_o = _factorized_noise(ko, O)

    # ---- tile selection: multiples of (8,128) that divide the padded dims -----
    B_pad = _round_up(B, 8)
    TB = _pick_tile(B_pad, 8, tb_max)
    if B_pad > tb_max and TB * 4 <= tb_max:
        # Pathological divisor structure: pad the batch instead of 8-row MXU tiles.
        TB = _round_up(tb_max, 8)
        B_pad = _round_up(B_pad, TB)
    TI = _pick_tile(I_pad, 128, ti_max)
    TO = _pick_tile(O_pad, 128, to_max)
    n_b, n_i = B_pad // TB, I_pad // TI
    n_o = O_pad // TO
    # v7x megacore: ensure >= 2 tiles on a parallel axis whenever possible.
    if n_b * n_o == 1 and O_pad > 128:
        TO = _pick_tile(O_pad, 128, O_pad // 2)
        n_o = O_pad // TO

    # ---- activations: only copy/pad when the shape is not already aligned ------
    if (B, I) == (B_pad, I_pad):
        x_p = x
    else:
        x_p = jnp.zeros((B_pad, I_pad), x.dtype).at[:B, :I].set(x)

    # ---- VMEM budget: actual double-buffered footprint + headroom --------------
    n_w_streams = 2 if training else 1
    vmem_req = (n_w_streams * 2 * TI * TO * wbytes    # weight tiles (double-buffered)
                + 2 * TB * TI * xbytes                # x tiles
                + 2 * TB * TO * 4                     # output/accumulator tiles
                + I_pad * 4 + 8 * TO * 4)             # resident eps_i + per-O vectors
    vmem_limit = max(int(vmem_req * 1.5) + (2 << 20), 16 << 20)

    comp = pltpu.CompilerParams(
        dimension_semantics=("parallel", "parallel", "arbitrary"),
        vmem_limit_bytes=vmem_limit)

    grid = (n_b, n_o, n_i)
    x_spec = pl.BlockSpec((TB, TI), lambda b, o, i: (b, i))
    w_spec = pl.BlockSpec((TI, TO), lambda b, o, i: (i, o))
    vo_spec = pl.BlockSpec((1, TO), lambda b, o, i: (0, o))
    out_spec = pl.BlockSpec((TB, TO), lambda b, o, i: (b, o))
    out_shape = jax.ShapeDtypeStruct((B_pad, O_pad), f32)

    if training:
        if I == I_pad:
            epsi = eps_i.astype(f32).reshape(1, I_pad)
        else:
            epsi = jnp.zeros((1, I_pad), f32).at[0, :I].set(eps_i.astype(f32))
        if O == O_pad:
            epso = eps_o.astype(f32).reshape(1, O_pad)
        else:
            epso = jnp.zeros((1, O_pad), f32).at[0, :O].set(eps_o.astype(f32))

        cost = pl.CostEstimate(
            flops=4 * B_pad * O_pad * I_pad + 4 * B_pad * O_pad,
            transcendentals=0,
            bytes_accessed=(n_o * B_pad * I_pad * xbytes          # x re-streamed per O-tile
                            + n_b * 2 * I_pad * O_pad * wbytes    # both weights per B-tile
                            + B_pad * O_pad * 4                   # output write
                            + I_pad * 4 + 3 * O_pad * 4))
        out = pl.pallas_call(
            _noisy_fwd_kernel,
            out_shape=out_shape,
            grid_spec=pltpu.PrefetchScalarGridSpec(
                num_scalar_prefetch=0, grid=grid,
                in_specs=[
                    x_spec,                                           # x
                    w_spec,                                           # mu_W.T   (bf16)
                    w_spec,                                           # sigma_W.T(bf16)
                    vo_spec,                                          # mu_b
                    vo_spec,                                          # sigma_b
                    pl.BlockSpec((1, I_pad), lambda b, o, i: (0, 0)),  # eps_i (resident)
                    vo_spec,                                          # eps_o
                ],
                out_specs=out_spec),
            compiler_params=comp,
            cost_estimate=cost,
        )(x_p, params["muwt"], params["sigwt"], params["mub"], params["sigb"],
          epsi, epso)
    else:
        cost = pl.CostEstimate(
            flops=2 * B_pad * O_pad * I_pad,
            transcendentals=0,
            bytes_accessed=(n_o * B_pad * I_pad * xbytes
                            + n_b * I_pad * O_pad * wbytes
                            + B_pad * O_pad * 4 + O_pad * 4))
        out = pl.pallas_call(
            _linear_fwd_kernel,
            out_shape=out_shape,
            grid_spec=pltpu.PrefetchScalarGridSpec(
                num_scalar_prefetch=0, grid=grid,
                in_specs=[x_spec, w_spec, vo_spec],
                out_specs=out_spec),
            compiler_params=comp,
            cost_estimate=cost,
        )(x_p, params["muwt"], params["mub"])

    return out[:B, :O].astype(x.dtype)


def noisy_linear(x, mu_W, sigma_W, mu_b, sigma_b, eps_i=None, eps_o=None,
                 training=True, key=None, weight_dtype=jnp.bfloat16, **tile_kw):
    """Convenience one-shot wrapper (prefer prepare_noisy_linear_params + caching)."""
    params = prepare_noisy_linear_params(mu_W, sigma_W, mu_b, sigma_b, weight_dtype)
    return noisy_linear_prepared(x, params, eps_i, eps_o, training=training,
                                 key=key, **tile_kw)


# ----------------------------------------------------------------------------- test
if __name__ == "__main__":
    f32 = jnp.float32

    # Small shapes consistent with the module: batch=2, in=32, out=32.
    B, I, O = 2, 32, 32
    key = jax.random.PRNGKey(0)
    k_x, k_w, k_b, k_ei, k_eo, k_x2, k_w2, k_b2 = jax.random.split(key, 8)

    bound = 1.0 / math.sqrt(I)
    mu_W = jax.random.uniform(k_w, (O, I), minval=-bound, maxval=bound, dtype=f32)
    mu_b = jax.random.uniform(k_b, (O,), minval=-bound, maxval=bound, dtype=f32)
    sigma_W = jnp.full((O, I), NOISY_SIGMA / math.sqrt(I), dtype=f32)
    sigma_b = jnp.full((O,), NOISY_SIGMA / math.sqrt(I), dtype=f32)

    x = jax.random.normal(k_x, (B, I), dtype=f32)
    eps_i = _factorized_noise(k_ei, I)
    eps_o = _factorized_noise(k_eo, O)

    # --- exact-precision check (f32 weight streaming) against the module math ---
    prep32 = prepare_noisy_linear_params(mu_W, sigma_W, mu_b, sigma_b,
                                         weight_dtype=f32)
    y = jax.block_until_ready(
        noisy_linear_prepared(x, prep32, eps_i, eps_o, training=True))
    W_ref = mu_W + sigma_W * jnp.outer(eps_o, eps_i)
    b_ref = mu_b + sigma_b * eps_o
    y_ref = x @ W_ref.T + b_ref
    assert jnp.allclose(y, y_ref, atol=1e-5, rtol=1e-5), "training-mode mismatch (f32)"

    y_eval = jax.block_until_ready(
        noisy_linear_prepared(x, prep32, training=False))
    assert jnp.allclose(y_eval, x @ mu_W.T + mu_b, atol=1e-5, rtol=1e-5), \
        "eval-mode mismatch (f32)"

    # --- default fast path: cached bf16 weight streaming, f32 accumulation ------
    prep_bf = prepare_noisy_linear_params(mu_W, sigma_W, mu_b, sigma_b)  # bf16
    y_bf = jax.block_until_ready(
        noisy_linear_prepared(x, prep_bf, eps_i, eps_o, training=True))
    xb = x.astype(jnp.bfloat16).astype(f32)
    xnb = (x * eps_i).astype(jnp.bfloat16).astype(f32)
    muW_bf = mu_W.astype(jnp.bfloat16).astype(f32)
    sigW_bf = sigma_W.astype(jnp.bfloat16).astype(f32)
    y_bf_ref = xb @ muW_bf.T + (xnb @ sigW_bf.T) * eps_o + mu_b + sigma_b * eps_o
    assert jnp.allclose(y_bf, y_bf_ref, atol=5e-3, rtol=5e-3), \
        "training-mode mismatch (bf16 weights)"

    # --- multi-tile grid (batch/O parallel axes + I reduction) exercised at small
    #     shapes by shrinking the tile caps: grid = (2, 2, 2). ---------------------
    B2, I2, O2 = 16, 256, 256
    bound2 = 1.0 / math.sqrt(I2)
    mu_W2 = jax.random.uniform(k_w2, (O2, I2), minval=-bound2, maxval=bound2, dtype=f32)
    mu_b2 = jax.random.uniform(k_b2, (O2,), minval=-bound2, maxval=bound2, dtype=f32)
    sigma_W2 = jnp.full((O2, I2), NOISY_SIGMA / math.sqrt(I2), dtype=f32)
    sigma_b2 = jnp.full((O2,), NOISY_SIGMA / math.sqrt(I2), dtype=f32)
    x2 = jax.random.normal(k_x2, (B2, I2), dtype=f32)
    eps_i2 = _factorized_noise(k_ei, I2)
    eps_o2 = _factorized_noise(k_eo, O2)

    prep32_2 = prepare_noisy_linear_params(mu_W2, sigma_W2, mu_b2, sigma_b2,
                                           weight_dtype=f32)
    y2 = jax.block_until_ready(
        noisy_linear_prepared(x2, prep32_2, eps_i2, eps_o2, training=True,
                              tb_max=8, ti_max=128, to_max=128))
    W2_ref = mu_W2 + sigma_W2 * jnp.outer(eps_o2, eps_i2)
    y2_ref = x2 @ W2_ref.T + (mu_b2 + sigma_b2 * eps_o2)
    assert jnp.allclose(y2, y2_ref, atol=1e-4, rtol=1e-4), "multi-tile mismatch"

    print("KERNEL_OK")
</pallas_src>

<mosaic_0001>
module attributes {stable_mosaic.version = 11 : i64} {
  func.func @_noisy_fwd_kernel(%arg0: i32, %arg1: i32, %arg2: i32, %arg3: memref<8x128xf32, #tpu.memory_space<vmem>>, %arg4: memref<128x128xf32, #tpu.memory_space<vmem>>, %arg5: memref<128x128xf32, #tpu.memory_space<vmem>>, %arg6: memref<1x128xf32, #tpu.memory_space<vmem>>, %arg7: memref<1x128xf32, #tpu.memory_space<vmem>>, %arg8: memref<1x128xf32, #tpu.memory_space<vmem>>, %arg9: memref<1x128xf32, #tpu.memory_space<vmem>>, %arg10: memref<8x128xf32, #tpu.memory_space<vmem>>) attributes {dimension_semantics = [#tpu.dimension_semantics<parallel>, #tpu.dimension_semantics<parallel>, #tpu.dimension_semantics<arbitrary>], iteration_bounds = array<i64: 1, 1, 1>, scalar_prefetch = 0 : i64, scratch_operands = 0 : i64, tpu.core_type = #tpu.core_type<tc>, window_params = [{transform_indices = @transform_0, window_bounds = array<i64: 8, 128>}, {transform_indices = @transform_1, window_bounds = array<i64: 128, 128>}, {transform_indices = @transform_2, window_bounds = array<i64: 128, 128>}, {transform_indices = @transform_3, window_bounds = array<i64: 1, 128>}, {transform_indices = @transform_4, window_bounds = array<i64: 1, 128>}, {pipeline_mode = #tpu.pipeline_mode<synchronous>, transform_indices = @transform_5, window_bounds = array<i64: 1, 128>}, {transform_indices = @transform_6, window_bounds = array<i64: 1, 128>}, {transform_indices = @transform_7, window_bounds = array<i64: 8, 128>}]} {
    %c0_i32 = arith.constant 0 : i32
    %0 = arith.cmpi eq, %arg2, %c0_i32 : i32
    %1 = arith.extui %0 : i1 to i32
    %c0_i32_0 = arith.constant 0 : i32
    %2 = arith.cmpi ne, %1, %c0_i32_0 : i32
    scf.if %2 {
      %cst_16 = arith.constant 0.000000e+00 : f32
      %24 = vector.broadcast %cst_16 : f32 to vector<8x128xf32>
      %c0_17 = arith.constant 0 : index
      %c0_18 = arith.constant 0 : index
      %25 = vector.load %arg10[%c0_17, %c0_18] : memref<8x128xf32, #tpu.memory_space<vmem>>, vector<8x128xf32>
      tpu.vector_store %arg10[%c0_17, %c0_18], %24 {strides = array<i32>} : memref<8x128xf32, #tpu.memory_space<vmem>>, vector<8x128xf32>,
    } else {
    }
    %c0 = arith.constant 0 : index
    %c0_1 = arith.constant 0 : index
    %3 = vector.load %arg3[%c0, %c0_1] : memref<8x128xf32, #tpu.memory_space<vmem>>, vector<8x128xf32>
    %c128_i32 = arith.constant 128 : i32
    %4 = arith.muli %arg2, %c128_i32 : i32
    %5 = tpu.assume_multiple %4, 128 : i32
    %c0_2 = arith.constant 0 : index
    %6 = arith.index_cast %5 : i32 to index
    %7 = vector.load %arg8[%c0_2, %6] : memref<1x128xf32, #tpu.memory_space<vmem>>, vector<1x128xf32>
    %c0_3 = arith.constant 0 : index
    %c0_4 = arith.constant 0 : index
    %8 = vector.load %arg9[%c0_3, %c0_4] : memref<1x128xf32, #tpu.memory_space<vmem>>, vector<1x128xf32>
    %c0_5 = arith.constant 0 : index
    %c0_6 = arith.constant 0 : index
    %9 = vector.load %arg4[%c0_5, %c0_6] : memref<128x128xf32, #tpu.memory_space<vmem>>, vector<128x128xf32>
    %cst = arith.constant dense<0.000000e+00> : vector<8x128xf32>
    %10 = tpu.matmul %3, %9, %cst {dimension_numbers = #tpu.dot_dimension_numbers<[1], [0], [0], [1], [0, 0, 1, 1], [], []>} : vector<8x128xf32>, vector<128x128xf32>, vector<8x128xf32> -> vector<8x128xf32>
    %11 = vector.broadcast %7 : vector<1x128xf32> to vector<8x128xf32>
    %12 = arith.mulf %3, %11 : vector<8x128xf32>
    %c0_7 = arith.constant 0 : index
    %c0_8 = arith.constant 0 : index
    %13 = vector.load %arg5[%c0_7, %c0_8] : memref<128x128xf32, #tpu.memory_space<vmem>>, vector<128x128xf32>
    %cst_9 = arith.constant dense<0.000000e+00> : vector<8x128xf32>
    %14 = tpu.matmul %12, %13, %cst_9 {dimension_numbers = #tpu.dot_dimension_numbers<[1], [0], [0], [1], [0, 0, 1, 1], [], []>} : vector<8x128xf32>, vector<128x128xf32>, vector<8x128xf32> -> vector<8x128xf32>
    %c0_10 = arith.constant 0 : index
    %c0_11 = arith.constant 0 : index
    %15 = vector.load %arg10[%c0_10, %c0_11] : memref<8x128xf32, #tpu.memory_space<vmem>>, vector<8x128xf32>
    %16 = vector.broadcast %8 : vector<1x128xf32> to vector<8x128xf32>
    %17 = arith.mulf %16, %14 : vector<8x128xf32>
    %18 = arith.addf %10, %17 : vector<8x128xf32>
    %19 = arith.addf %15, %18 : vector<8x128xf32>
    %c0_12 = arith.constant 0 : index
    %c0_13 = arith.constant 0 : index
    %20 = vector.load %arg10[%c0_12, %c0_13] : memref<8x128xf32, #tpu.memory_space<vmem>>, vector<8x128xf32>
    tpu.vector_store %arg10[%c0_12, %c0_13], %19 {strides = array<i32>} : memref<8x128xf32, #tpu.memory_space<vmem>>, vector<8x128xf32>,
    %c0_i32_14 = arith.constant 0 : i32
    %21 = arith.cmpi eq, %arg2, %c0_i32_14 : i32
    %22 = arith.extui %21 : i1 to i32
    %c0_i32_15 = arith.constant 0 : i32
    %23 = arith.cmpi ne, %22, %c0_i32_15 : i32
    scf.if %23 {
      %c0_16 = arith.constant 0 : index
      %c0_17 = arith.constant 0 : index
      %24 = vector.load %arg10[%c0_16, %c0_17] : memref<8x128xf32, #tpu.memory_space<vmem>>, vector<8x128xf32>
      %c0_18 = arith.constant 0 : index
      %c0_19 = arith.constant 0 : index
      %25 = vector.load %arg6[%c0_18, %c0_19] : memref<1x128xf32, #tpu.memory_space<vmem>>, vector<1x128xf32>
      %c0_20 = arith.constant 0 : index
      %c0_21 = arith.constant 0 : index
      %26 = vector.load %arg7[%c0_20, %c0_21] : memref<1x128xf32, #tpu.memory_space<vmem>>, vector<1x128xf32>
      %27 = arith.mulf %26, %8 : vector<1x128xf32>
      %28 = arith.addf %25, %27 : vector<1x128xf32>
      %29 = vector.broadcast %28 : vector<1x128xf32> to vector<8x128xf32>
      %30 = arith.addf %24, %29 : vector<8x128xf32>
      %c0_22 = arith.constant 0 : index
      %c0_23 = arith.constant 0 : index
      %31 = vector.load %arg10[%c0_22, %c0_23] : memref<8x128xf32, #tpu.memory_space<vmem>>, vector<8x128xf32>
      tpu.vector_store %arg10[%c0_22, %c0_23], %30 {strides = array<i32>} : memref<8x128xf32, #tpu.memory_space<vmem>>, vector<8x128xf32>,
    } else {
    }
    return
  }
  func.func @transform_0(%arg0: i32, %arg1: i32, %arg2: i32) -> (i32, i32) {
    %c0_i32 = arith.constant 0 : i32
    return %arg0, %arg2 : i32, i32
  }
  func.func @transform_1(%arg0: i32, %arg1: i32, %arg2: i32) -> (i32, i32) {
    %c0_i32 = arith.constant 0 : i32
    return %arg2, %arg1 : i32, i32
  }
  func.func @transform_2(%arg0: i32, %arg1: i32, %arg2: i32) -> (i32, i32) {
    %c0_i32 = arith.constant 0 : i32
    return %arg2, %arg1 : i32, i32
  }
  func.func @transform_3(%arg0: i32, %arg1: i32, %arg2: i32) -> (i32, i32) {
    %c0_i32 = arith.constant 0 : i32
    %c0_i32_0 = arith.constant 0 : i32
    return %c0_i32, %arg1 : i32, i32
  }
  func.func @transform_4(%arg0: i32, %arg1: i32, %arg2: i32) -> (i32, i32) {
    %c0_i32 = arith.constant 0 : i32
    %c0_i32_0 = arith.constant 0 : i32
    return %c0_i32, %arg1 : i32, i32
  }
  func.func @transform_5(%arg0: i32, %arg1: i32, %arg2: i32) -> (i32, i32) {
    %c0_i32 = arith.constant 0 : i32
    %c0_i32_0 = arith.constant 0 : i32
    %c0_i32_1 = arith.constant 0 : i32
    return %c0_i32, %c0_i32_0 : i32, i32
  }
  func.func @transform_6(%arg0: i32, %arg1: i32, %arg2: i32) -> (i32, i32) {
    %c0_i32 = arith.constant 0 : i32
    %c0_i32_0 = arith.constant 0 : i32
    return %c0_i32, %arg1 : i32, i32
  }
  func.func @transform_7(%arg0: i32, %arg1: i32, %arg2: i32) -> (i32, i32) {
    %c0_i32 = arith.constant 0 : i32
    return %arg0, %arg1 : i32, i32
  }
}

</mosaic_0001>

<bundles_post_ra>
// kernel: tpu_custom_call.1
= control target key start
LH: loop header
LB: loop body
LE: loop exit
PB: predicated region body
PF: predicated region fallthrough
CT: control target
= control target key end

     0   :  { %12 = vsyncpa [#allocation3], 0  ;;  %s687_s0 = inlined_call_operand.hbm [shape: f32[8,128], index: 0, kind: input, shape index: {}]   ;;  %s688_s1 = inlined_call_operand.hbm [shape: f32[128,128], index: 1, kind: input, shape index: {}]   ;;  %s689_s2 = inlined_call_operand.hbm [shape: f32[128,128], index: 2, kind: input, shape index: {}]   ;;  %s690_s3 = inlined_call_operand.vmem [shape: f32[1,128], index: 3, kind: input, shape index: {}]   ;;  %s691_s4 = inlined_call_operand.vmem [shape: f32[1,128], index: 4, kind: input, shape index: {}]   ;;  %s692_s5 = inlined_call_operand.vmem [shape: f32[1,128], index: 5, kind: input, shape index: {}]   ;;  %s693_s6 = inlined_call_operand.vmem [shape: f32[1,128], index: 6, kind: input, shape index: {}]   ;;  %s694_s7 = inlined_call_operand.hbm [shape: f32[8,128], index: 7, kind: output, shape index: {}]  }
   0x1   :  { %13 = vsyncpa [#allocation6], 0 }
   0x2   :  { %14 = vsyncpa [#allocation4], 0  ;;  %s556_s24 = smov [#allocation5]   ;;  %s462_s28 = scalar_lea.hbm %s688_s1, 2048 }
   0x3   :  { %s30_s25 = sshll.u32 %s556_s24, 4  ;;  %p463_p0 = scmp.ne.s32.totalorder %s688_s1, %s462_s28  ;;  %s31_s25 = int_to_ptr.vmem [resolvable:$true] %s30_s25 }
   0x4   :  { %p466_p1 = scmp.lt.u32.totalorder %s462_s28, %s688_s1 }
   0x6   :  { %p468_p2 = pnand %p466_p1, %p463_p0 }
   0x8   :  { %471 = shalt.err (!%p468_p2)
}
   0x9   :  { %s472_s10 = scalar_lea.vmem %s31_s25, 2048  ;;  %p477_p4 = scmp.lt.s32.totalorder %s31_s25, %s31_s25 }
   0xa   :  { %p473_p3 = scmp.ne.s32.totalorder %s31_s25, %s472_s10  ;;  %p478_p5 = scmp.lt.s32.totalorder %s472_s10, %s472_s10 }
   0xc   :  { %p479_p6 = por %p478_p5, %p477_p4 }
   0xe   :  { %p480_p7 = pnand %p479_p6, %p473_p3 }
  0x10   :  { %483 = shalt.err (!%p480_p7)
}
  0x11   :  { %s557_s11 = smov 128   ;;  %s558_s12 = smov 8  }
  0x12   :  { %36 = dma.hbm_to_vmem [thread:$0]  %s688_s1, 2048, %s31_s25, [#allocation6], %s557_s11, %s557_s11, %s558_s12  }
  0x13   :  { %s559_s15 = smov [#allocation2]   ;;  %s560_s17 = smov [#allocation7]  }
  0x14   :  { %s21_s16 = sshll.u32 %s559_s15, 4  ;;  %s42_s18 = sshll.u32 %s560_s17, 4  ;;  %s22_s16 = int_to_ptr.vmem [resolvable:$true] %s21_s16  ;;  %s43_s18 = int_to_ptr.vmem [resolvable:$true] %s42_s18 }
  0x15   :  { %s484_s21 = scalar_lea.hbm %s687_s0, 128 }
  0x16   :  { %p485_p8 = scmp.ne.s32.totalorder %s687_s0, %s484_s21  ;;  %p488_p9 = scmp.lt.u32.totalorder %s484_s21, %s687_s0 }
  0x18   :  { %p490_p10 = pnand %p488_p9, %p485_p8 }
  0x1a   :  { %493 = shalt.err (!%p490_p10)
}
  0x1b   :  { %s494_s1 = scalar_lea.vmem %s22_s16, 128  ;;  %p499_p12 = scmp.lt.s32.totalorder %s22_s16, %s22_s16 }
  0x1c   :  { %p495_p11 = scmp.ne.s32.totalorder %s22_s16, %s494_s1  ;;  %p500_p13 = scmp.lt.s32.totalorder %s494_s1, %s494_s1 }
  0x1e   :  { %p501_p0 = por %p500_p13, %p499_p12 }
  0x20   :  { %p502_p1 = pnand %p501_p0, %p495_p11 }
  0x22   :  { %505 = shalt.err (!%p502_p1)
}
  0x23   :  { %24 = dma.hbm_to_vmem [thread:$0]  %s687_s0, 128, %s22_s16, [#allocation3]  }
  0x24   :  { %s506_s30 = scalar_lea.hbm %s689_s2, 2048 }
  0x25   :  { %p507_p2 = scmp.ne.s32.totalorder %s689_s2, %s506_s30  ;;  %p510_p3 = scmp.lt.u32.totalorder %s506_s30, %s689_s2 }
  0x27   :  { %p512_p4 = pnand %p510_p3, %p507_p2 }
  0x29   :  { %515 = shalt.err (!%p512_p4)
}
  0x2a   :  { %s516_s14 = scalar_lea.vmem %s43_s18, 2048  ;;  %p521_p6 = scmp.lt.s32.totalorder %s43_s18, %s43_s18 }
  0x2b   :  { %p517_p5 = scmp.ne.s32.totalorder %s43_s18, %s516_s14  ;;  %p522_p7 = scmp.lt.s32.totalorder %s516_s14, %s516_s14 }
  0x2d   :  { %p523_p8 = por %p522_p7, %p521_p6 }
  0x2f   :  { %p524_p9 = pnand %p523_p8, %p517_p5 }
  0x31   :  { %527 = shalt.err (!%p524_p9)
}
  0x32   :  { %48 = dma.hbm_to_vmem [thread:$0]  %s689_s2, 2048, %s43_s18, [#allocation6], %s557_s11, %s557_s11, %s558_s12  }
  0x33   :  { %550 = dma.done.wait [#allocation3], 128  }
  0x34   :  { %551 = vsyncadd [#allocation3], 4294967168 }
  0x35   :  { %552 = dma.done.wait [#allocation6], 4096  }
  0x36   :  { %553 = vsyncadd [#allocation6], 4294963200  ;;  %v561_v0 = vmov 0.0|0.0   ;;  %vm562_vm0 = vmmov 0   ;;  %v563_v1 = vmov 0.0   ;;  %v101_v2 = vld [vmem:[#allocation7] sm:$0xff]  ;;  %v189_v53 = vlaneseq }
  0x37   :  { %405 = vmatprep.subr.bf16.mxu0 %v561_v0  ;;  %429 = vmatprep.subr.bf16.mxu1 %v561_v0  ;;  %v102_v3 = vld [vmem:[#allocation7 + $0x8] sm:$0xff]  ;;  %v78_v4 = vld [vmem:[#allocation5] sm:$0xff]  ;;  %v103_v7 = vld [vmem:[#allocation7 + $0x10] sm:$0xff] }
  0x38   :  { %367 = vmatprep.mubr.msk.f32.mxu0 %vm562_vm0, %v563_v1  ;;  %402 = vmatprep.mubr.msk.f32.mxu1 %vm562_vm0, %v563_v1  ;;  %v406_v5 = vpack.c.bf16 %v102_v3, %v101_v2  ;;  %v79_v6 = vld [vmem:[#allocation5 + $0x8] sm:$0xff]  ;;  %v104_v8 = vld [vmem:[#allocation7 + $0x18] sm:$0xff]  ;;  %v80_v10 = vld [vmem:[#allocation5 + $0x10] sm:$0xff]  ;;  %v190_v54 = vshrl.u32 %v189_v53, 7 }
  0x39   :  { %v430_v9 = vpack.c.bf16 %v79_v6, %v78_v4  ;;  %v81_v11 = vld [vmem:[#allocation5 + $0x18] sm:$0xff]  ;;  %v409_v12 = vpack.c.bf16 %v104_v8, %v103_v7  ;;  %v105_v14 = vld [vmem:[#allocation7 + $0x20] sm:$0xff]  ;;  %v106_v15 = vld [vmem:[#allocation7 + $0x28] sm:$0xff] }
  0x3a   :  { %407 = vmatpush3.bf16.msra.mxu0 %v406_v5  ;;  %v433_v13 = vpack.c.bf16 %v81_v11, %v80_v10  ;;  %v82_v16 = vld [vmem:[#allocation5 + $0x20] sm:$0xff]  ;;  %v83_v17 = vld [vmem:[#allocation5 + $0x28] sm:$0xff]  ;;  %v412_v18 = vpack.c.bf16 %v106_v15, %v105_v14  ;;  %v107_v20 = vld [vmem:[#allocation7 + $0x30] sm:$0xff]  ;;  %v191_v56 = vsub.s32 0, %v190_v54 }
  0x3b   :  { %431 = vmatpush3.bf16.msra.mxu1 %v430_v9  ;;  %408 = vmatprep.subr.bf16.mxu0 %v561_v0  ;;  %v436_v19 = vpack.c.bf16 %v83_v17, %v82_v16  ;;  %v108_v21 = vld [vmem:[#allocation7 + $0x38] sm:$0xff]  ;;  %v84_v22 = vld [vmem:[#allocation5 + $0x30] sm:$0xff]  ;;  %v109_v26 = vld [vmem:[#allocation7 + $0x40] sm:$0xff] }
  0x3c   :  { %432 = vmatprep.subr.bf16.mxu1 %v561_v0  ;;  %v85_v23 = vld [vmem:[#allocation5 + $0x38] sm:$0xff]  ;;  %v415_v24 = vpack.c.bf16 %v108_v21, %v107_v20  ;;  %v110_v27 = vld [vmem:[#allocation7 + $0x48] sm:$0xff]  ;;  %v86_v28 = vld [vmem:[#allocation5 + $0x40] sm:$0xff] }
  0x3d   :  { %v439_v25 = vpack.c.bf16 %v85_v23, %v84_v22  ;;  %v87_v29 = vld [vmem:[#allocation5 + $0x48] sm:$0xff]  ;;  %v418_v30 = vpack.c.bf16 %v110_v27, %v109_v26  ;;  %v111_v32 = vld [vmem:[#allocation7 + $0x50] sm:$0xff]  ;;  %v112_v33 = vld [vmem:[#allocation7 + $0x58] sm:$0xff] }
  0x3e   :  { %410 = vmatpush3.bf16.msra.mxu0 %v409_v12  ;;  %v442_v31 = vpack.c.bf16 %v87_v29, %v86_v28  ;;  %v88_v34 = vld [vmem:[#allocation5 + $0x50] sm:$0xff]  ;;  %v89_v35 = vld [vmem:[#allocation5 + $0x58] sm:$0xff]  ;;  %v421_v36 = vpack.c.bf16 %v112_v33, %v111_v32  ;;  %v113_v38 = vld [vmem:[#allocation7 + $0x60] sm:$0xff] }
  0x3f   :  { %434 = vmatpush3.bf16.msra.mxu1 %v433_v13  ;;  %411 = vmatprep.subr.bf16.mxu0 %v561_v0  ;;  %v445_v37 = vpack.c.bf16 %v89_v35, %v88_v34  ;;  %v114_v39 = vld [vmem:[#allocation7 + $0x68] sm:$0xff]  ;;  %v90_v40 = vld [vmem:[#allocation5 + $0x60] sm:$0xff]  ;;  %v115_v44 = vld [vmem:[#allocation7 + $0x70] sm:$0xff] }
  0x40   :  { %435 = vmatprep.subr.bf16.mxu1 %v561_v0  ;;  %v91_v41 = vld [vmem:[#allocation5 + $0x68] sm:$0xff]  ;;  %v424_v42 = vpack.c.bf16 %v114_v39, %v113_v38  ;;  %v116_v45 = vld [vmem:[#allocation7 + $0x78] sm:$0xff]  ;;  %v92_v46 = vld [vmem:[#allocation5 + $0x70] sm:$0xff] }
  0x41   :  { %v448_v43 = vpack.c.bf16 %v91_v41, %v90_v40  ;;  %v93_v47 = vld [vmem:[#allocation5 + $0x78] sm:$0xff]  ;;  %v427_v48 = vpack.c.bf16 %v116_v45, %v115_v44 }
  0x42   :  { %413 = vmatpush3.bf16.msra.mxu0 %v412_v18  ;;  %v71_v49 = vld [vmem:[#allocation2] sm:$0xff]  ;;  %v451_v51 = vpack.c.bf16 %v93_v47, %v92_v46 }
  0x43   :  { %437 = vmatpush3.bf16.msra.mxu1 %v436_v19  ;;  %414 = vmatprep.subr.bf16.mxu0 %v561_v0  ;;  %v300_v50 = vld [vmem:[%s692_s5] ss:$0 sm:$0xff] }
  0x44   :  { %438 = vmatprep.subr.bf16.mxu1 %v561_v0  ;;  %v100_v52 = vmul.f32 %v300_v50, %v71_v49  ;;  %v272_v55 = vld [vmem:[%s691_s4] sm:$0x1]  ;;  %s564_s4 = smov [#allocation8]  }
  0x45   :  { %v77_v57 = vld [vmem:[%s693_s6] sm:$0x1]  ;;  %s289_s20 = sshll.u32 %s564_s4, 4  ;;  %s290_s20 = int_to_ptr.vmem [resolvable:$true] %s289_s20 }
  0x46   :  { %416 = vmatpush3.bf16.msra.mxu0 %v415_v24  ;;  %v273_v58 = vmul.f32 %v272_v55, %v77_v57  ;;  %v271_v59 = vld [vmem:[%s690_s3] sm:$0x1]  ;;  %v192_v60 = vrot.slane %v77_v57, %v191_v56  ;;  %s528_s6 = scalar_lea.vmem %s290_s20, 128  ;;  %p533_p11 = scmp.lt.s32.totalorder %s290_s20, %s290_s20 }
  0x47   :  { %440 = vmatpush3.bf16.msra.mxu1 %v439_v25  ;;  %417 = vmatprep.subr.bf16.mxu0 %v561_v0  ;;  %p529_p10 = scmp.ne.s32.totalorder %s290_s20, %s528_s6  ;;  %p534_p12 = scmp.lt.s32.totalorder %s528_s6, %s528_s6 }
  0x48   :  { %441 = vmatprep.subr.bf16.mxu1 %v561_v0  ;;  %v274_v61 = vadd.f32 %v273_v58, %v271_v59 }
  0x49   :  { %p535_p13 = por %p534_p12, %p533_p11 }
  0x4a   :  { %419 = vmatpush3.bf16.msra.mxu0 %v418_v30  ;;  %v279_v3 = vrot.slane %v274_v61, %v191_v56 }
  0x4b   :  { %443 = vmatpush3.bf16.msra.mxu1 %v442_v31  ;;  %420 = vmatprep.subr.bf16.mxu0 %v561_v0  ;;  %p536_p0 = pnand %p535_p13, %p529_p10 }
  0x4c   :  { %444 = vmatprep.subr.bf16.mxu1 %v561_v0 }
  0x4e   :  { %422 = vmatpush3.bf16.msra.mxu0 %v421_v36 }
  0x4f   :  { %446 = vmatpush3.bf16.msra.mxu1 %v445_v37  ;;  %423 = vmatprep.subr.bf16.mxu0 %v561_v0 }
  0x50   :  { %447 = vmatprep.subr.bf16.mxu1 %v561_v0 }
  0x52   :  { %425 = vmatpush3.bf16.msra.mxu0 %v424_v42 }
  0x53   :  { %449 = vmatpush3.bf16.msra.mxu1 %v448_v43  ;;  %426 = vmatprep.subr.bf16.mxu0 %v561_v0 }
  0x54   :  { %450 = vmatprep.subr.bf16.mxu1 %v561_v0 }
  0x56   :  { %428 = vmatpush3.bf16.msra.mxu0 %v427_v48 }
  0x57   :  { %452 = vmatpush3.bf16.msra.mxu1 %v451_v51 }
  0x59   :  { %368 = vmatmul.mubr.f32.vlgmr.msra.gmra.mrb[0].mxu0 %v100_v52 }
  0x5a   :  { %403 = vmatmul.mubr.f32.vlgmr.msra.gmra.mrb[0].mxu1 %v71_v49 }
 0x12c   :  { %v183_v62 = vpop.f32.mrb[0].mxu0 }
 0x12d   :  { %v194_v63 = vmul.f32 %v192_v60, %v183_v62  ;;  %v369_v0 = vpop.f32.mrb[1].mxu0  ;;  %v261_v1 = vpop.f32.mrb[0].mxu1 }
 0x12e   :  { %v404_v2 = vpop.f32.mrb[1].mxu1 }
 0x12f   :  { %v262_v4 = vadd.f32 %v261_v1, %v194_v63 }
 0x131   :  { %v281_v5 = vadd.f32 %v279_v3, %v262_v4 }
 0x133   :  { %282 = vst [vmem:[#allocation8] sm:$0xff] %v281_v5 }
 0x134   :  { %539 = shalt.err (!%p536_p0)
}
 0x135   :  { %s540_s22 = scalar_lea.hbm %s694_s7, 128 }
 0x136   :  { %p541_p1 = scmp.ne.s32.totalorder %s694_s7, %s540_s22  ;;  %p544_p2 = scmp.lt.u32.totalorder %s540_s22, %s694_s7 }
 0x138   :  { %p546_p3 = pnand %p544_p2, %p541_p1 }
 0x13a   :  { %549 = shalt.err (!%p546_p3)
}
 0x13b   :  { %292 = dma.vmem_to_hbm [thread:$0]  %s290_s20, 128, %s694_s7, [#allocation4]  }
 0x13c   :  { %554 = dma.done.wait [#allocation4], 128  }
 0x13d   :  { %555 = vsyncadd [#allocation4], 4294967168 }
 0x13e   :  { %296 = vsyncpa [#allocation3], 1 }
 0x13f   :  { %297 = vsyncpa [#allocation6], 1 }
 0x140   :  { %298 = vsyncpa [#allocation4], 1 }

</bundles_post_ra>
